<compile_context>
chip_gen: v6e
topology: v6e:2x2x1
jax: 0.10.0
libtpu: 0.0.40
codegen_flags: <defaults>
</compile_context>

<pallas_src>
import functools

import jax
import jax.numpy as jnp
from jax.experimental import pallas as pl
from jax.experimental.pallas import tpu as pltpu


_LANE = 128
_SUBLANE = 8

# layer activations of the Autoencoder (encoder 3 layers + decoder 3 layers)
_ACTS = ("relu", "relu", "none", "relu", "relu", "sigmoid")


# ----------------------------------------------------------------------------
# helpers
# ----------------------------------------------------------------------------
def _round_up(x, m):
    return (x + m - 1) // m * m


def _pad2d(a, rows, cols):
    r, c = a.shape
    if r == rows and c == cols:
        return a
    return jnp.pad(a, ((0, rows - r), (0, cols - c)))


def _apply_act(y, activation):
    if activation == "relu":
        return jnp.maximum(y, 0.0)
    if activation == "sigmoid":
        return jax.nn.sigmoid(y)
    return y


def _vmem_capacity_bytes():
    """Physical VMEM of the current chip; conservative fallback if query fails."""
    try:
        return int(pltpu.get_tpu_info().vmem_capacity_bytes)
    except Exception:
        return 64 * 1024 * 1024  # v7x-sized (smallest current generation)


def _vmem_limit_bytes():
    # Explicit scoped-VMEM limit for every pallas_call (defaults: 16 MiB v5e / 32 MiB
    # v6e,v7x are too small for the resident plans below).
    return int(_vmem_capacity_bytes() * 4 // 5)


def _default_fuse_budget_bytes():
    # ~41 MiB on v7x (64 MiB phys), ~83 MiB on v5e/v6e (128 MiB phys).
    return int(_vmem_capacity_bytes() * 13 // 20)


def _default_weight_tile_budget_bytes():
    # double-buffered streamed weight tile budget: ~8 MiB on v7x, 16 MiB on v5e/v6e.
    return min(16 * 1024 * 1024, _vmem_capacity_bytes() // 8)


def _largest_tile(total, cap):
    """Largest multiple-of-128 divisor of `total` that is <= cap (floored at 128)."""
    cap = max(int(cap), _LANE)
    if total <= cap:
        return total
    best = _LANE
    t = _LANE
    while t <= cap:
        if total % t == 0:
            best = t
        t += _LANE
    return best


def _choose_tm(mp, cap=256):
    """Largest multiple-of-8 divisor of mp that is <= cap."""
    if mp <= cap:
        return mp
    best = _SUBLANE
    t = _SUBLANE
    while t <= cap:
        if mp % t == 0:
            best = t
        t += _SUBLANE
    return best


# ----------------------------------------------------------------------------
# Fused multi-layer kernel (all weights of the group VMEM-resident, M-tiled grid)
# ----------------------------------------------------------------------------
def _fused_group_kernel(*refs, activations):
    x_ref = refs[0]
    o_ref = refs[-1]
    layer_refs = refs[1:-1]  # w0, b0, w1, b1, ...

    h = x_ref[...]
    for li, act in enumerate(activations):
        w = layer_refs[2 * li][...]       # bf16, MXU-native
        b = layer_refs[2 * li + 1][...]   # f32 (1, N)
        y = jnp.dot(h.astype(w.dtype), w, preferred_element_type=jnp.float32) + b
        h = _apply_act(y, act)            # epilogue in f32 (v5e has no bf16 VPU/EUP)
    o_ref[...] = h.astype(o_ref.dtype)


def _fused_group_forward(xp, layers, activations, out_dtype):
    Mp, Kp = xp.shape
    Nout = layers[-1][0].shape[1]
    tm = _choose_tm(Mp)

    flat = []
    in_specs = [pl.BlockSpec((tm, Kp), lambda i: (i, 0))]
    for w, b in layers:
        flat.extend([w, b])
        # constant block index -> DMA'd once, stays resident across the M grid
        in_specs.append(pl.BlockSpec(w.shape, lambda i: (0, 0)))
        in_specs.append(pl.BlockSpec(b.shape, lambda i: (0, 0)))

    kernel = functools.partial(_fused_group_kernel, activations=tuple(activations))
    return pl.pallas_call(
        kernel,
        out_shape=jax.ShapeDtypeStruct((Mp, Nout), out_dtype),
        grid=(Mp // tm,),
        in_specs=in_specs,
        out_specs=pl.BlockSpec((tm, Nout), lambda i: (i, 0)),
        compiler_params=pltpu.CompilerParams(
            dimension_semantics=("parallel",),
            vmem_limit_bytes=_vmem_limit_bytes(),
        ),
    )(xp, *flat)


# ----------------------------------------------------------------------------
# Streamed single-layer kernels (weight-bandwidth-bound big layers)
# ----------------------------------------------------------------------------
def _linear_act_fullk_kernel(x_ref, w_ref, b_ref, o_ref, *, activation):
    # Single K step: no accumulator scratch, no init/finalize pl.when.
    y = jnp.dot(x_ref[...].astype(w_ref.dtype), w_ref[...],
                preferred_element_type=jnp.float32)
    y = y + b_ref[...]
    o_ref[...] = _apply_act(y, activation).astype(o_ref.dtype)


def _linear_act_ktiled_kernel(x_ref, w_ref, b_ref, o_ref, acc_ref, *, activation):
    k = pl.program_id(1)

    @pl.when(k == 0)
    def _():
        acc_ref[...] = jnp.zeros_like(acc_ref)

    acc_ref[...] += jnp.dot(x_ref[...].astype(w_ref.dtype), w_ref[...],
                            preferred_element_type=jnp.float32)

    @pl.when(k == pl.num_programs(1) - 1)
    def _():
        y = acc_ref[...] + b_ref[...]
        o_ref[...] = _apply_act(y, activation).astype(o_ref.dtype)


def linear_act(x, w, b, activation="none", *, out_dtype=jnp.float32,
               weight_tile_budget_bytes=None):
    """y = activation(x @ w + b) with byte-capped streamed weight tiles.

    x:(Mp,Kp) f32/bf16 padded, w:(Kp,Np) bf16, b:(1,Np) f32.
    """
    M, K = x.shape
    K2, N = w.shape
    assert K == K2 and b.shape == (1, N)
    assert M % _SUBLANE == 0 and K % _LANE == 0 and N % _LANE == 0

    if weight_tile_budget_bytes is None:
        weight_tile_budget_bytes = _default_weight_tile_budget_bytes()
    wbytes = jnp.dtype(w.dtype).itemsize

    # widest N tile such that the double-buffered full-K weight tile fits the budget
    max_tn = weight_tile_budget_bytes // (2 * K * wbytes)
    use_ktile = (max_tn < _LANE) and (K > _LANE)

    kernel_params = pltpu.CompilerParams(
        dimension_semantics=("parallel",) if not use_ktile else ("parallel", "arbitrary"),
        vmem_limit_bytes=_vmem_limit_bytes(),
    )

    if not use_ktile:
        if N <= 2 * _LANE:
            col_cap = N
        else:
            # aim for >=2 N tiles so both v7x TensorCores get work
            col_cap = max(min(max_tn, N // 2, 4096), _LANE)
        tn = _largest_tile(N, col_cap)
        grid = (N // tn,)
        kernel = functools.partial(_linear_act_fullk_kernel, activation=activation)
        return pl.pallas_call(
            kernel,
            out_shape=jax.ShapeDtypeStruct((M, N), out_dtype),
            grid=grid,
            in_specs=[
                # activation block: constant block index -> DMA'd once, resident
                pl.BlockSpec((M, K), lambda j: (0, 0)),
                # weights streamed over wide N tiles (full K, single reduction step)
                pl.BlockSpec((K, tn), lambda j: (0, j)),
                pl.BlockSpec((1, tn), lambda j: (0, j)),
            ],
            out_specs=pl.BlockSpec((M, tn), lambda j: (0, j)),
            compiler_params=kernel_params,
        )(x, w, b)

    # K-tiled reduction path (genome-sized K): byte-capped (tk, tn) weight tiles,
    # f32 VMEM accumulator, K grid axis last / "arbitrary".
    tn = _largest_tile(N, max(_LANE, weight_tile_budget_bytes // (2 * _LANE * wbytes)))
    if N > 2 * _LANE:
        tn = min(tn, _largest_tile(N, N // 2))
    tk = _largest_tile(K, max(_LANE, weight_tile_budget_bytes // (2 * tn * wbytes)))
    grid = (N // tn, K // tk)
    kernel = functools.partial(_linear_act_ktiled_kernel, activation=activation)
    return pl.pallas_call(
        kernel,
        out_shape=jax.ShapeDtypeStruct((M, N), out_dtype),
        grid=grid,
        in_specs=[
            pl.BlockSpec((M, tk), lambda j, k: (0, k)),
            pl.BlockSpec((tk, tn), lambda j, k: (k, j)),
            pl.BlockSpec((1, tn), lambda j, k: (0, j)),
        ],
        out_specs=pl.BlockSpec((M, tn), lambda j, k: (0, j)),
        scratch_shapes=[pltpu.VMEM((M, tn), jnp.float32)],
        compiler_params=kernel_params,
    )(x, w, b)


# ----------------------------------------------------------------------------
# Parameter preparation
# ----------------------------------------------------------------------------
def init_params(key, layer_dims):
    """PyTorch-like uniform(+/- 1/sqrt(fan_in)) init; weights stored as (in, out)."""
    params = []
    for fan_in, fan_out in layer_dims:
        key, kw, kb = jax.random.split(key, 3)
        bound = float(fan_in) ** -0.5
        w = jax.random.uniform(kw, (fan_in, fan_out), jnp.float32, -bound, bound)
        b = jax.random.uniform(kb, (fan_out,), jnp.float32, -bound, bound)
        params.append((w, b))
    return params


def prepare_params(params, weight_dtype=jnp.bfloat16):
    """Zero-pad every layer to lane multiples; weights -> bf16, biases -> f32 (1, N)."""
    prepared = []
    for w, b in params:
        k, n = w.shape
        kp, np_ = _round_up(k, _LANE), _round_up(n, _LANE)
        wp = _pad2d(w, kp, np_).astype(weight_dtype)
        bp = _pad2d(b.reshape(1, n).astype(jnp.float32), 1, np_)
        prepared.append((wp, bp))
    return prepared


# ----------------------------------------------------------------------------
# Fused-group VMEM footprint estimate (peak, not sum, of layer activations)
# ----------------------------------------------------------------------------
def _fused_group_bytes(tm, layers):
    total = 0
    for w, b in layers:
        # count x2 to stay safe against the pipeline allocating double buffers
        total += 2 * (w.size * w.dtype.itemsize + b.size * b.dtype.itemsize)
    prev = layers[0][0].shape[0]
    act_peak = 0
    for w, _ in layers:
        nout = w.shape[1]
        # f32 input + f32 output + bf16 copy of the input feeding the MXU
        act_peak = max(act_peak, tm * (prev + nout) * 4 + tm * prev * 2)
        prev = nout
    io = 2 * tm * layers[0][0].shape[0] * 4 + 2 * tm * layers[-1][0].shape[1] * 4
    return total + act_peak + io


# ----------------------------------------------------------------------------
# Forward pass
# ----------------------------------------------------------------------------
def autoencoder_forward(x, prepared, *, force_per_layer=False,
                        fuse_budget_bytes=None, weight_tile_budget_bytes=None):
    """Forward pass of the Autoencoder. Returns (batch, input_dim) in f32."""
    M, K = x.shape
    Kp = prepared[0][0].shape[0]
    Mp = _round_up(M, _SUBLANE)
    xp = _pad2d(x.astype(jnp.float32), Mp, Kp)

    if fuse_budget_bytes is None:
        fuse_budget_bytes = _default_fuse_budget_bytes()
    tm = _choose_tm(Mp)

    # Hybrid plan: greedily pack consecutive layers into fused VMEM-resident groups;
    # layers whose weights do not fit on their own (e.g. genome-sized input_dim layers)
    # get the streamed (N / K tiled) path.
    plan = []
    cur = []
    for idx in range(len(prepared)):
        if force_per_layer:
            plan.append(("stream", [idx]))
            continue
        cand = cur + [idx]
        if _fused_group_bytes(tm, [prepared[i] for i in cand]) <= fuse_budget_bytes:
            cur = cand
        else:
            if cur:
                plan.append(("fused", cur))
                cur = []
            if _fused_group_bytes(tm, [prepared[idx]]) <= fuse_budget_bytes:
                cur = [idx]
            else:
                plan.append(("stream", [idx]))
    if cur:
        plan.append(("fused", cur))

    h = xp
    for gi, (kind, idxs) in enumerate(plan):
        last = gi == len(plan) - 1
        # bf16 intermediates between kernels; f32 only for the final sigmoid output
        out_dtype = jnp.float32 if last else jnp.bfloat16
        if kind == "fused":
            layers = [prepared[i] for i in idxs]
            acts = [_ACTS[i] for i in idxs]
            h = _fused_group_forward(h, layers, acts, out_dtype)
        else:
            i = idxs[0]
            w, b = prepared[i]
            h = linear_act(h, w, b, _ACTS[i], out_dtype=out_dtype,
                           weight_tile_budget_bytes=weight_tile_budget_bytes)
    # autoencoder: last layer maps back to input_dim -> slice padding off
    return h[:M, :K]


# ----------------------------------------------------------------------------
# Pure-JAX reference (mirrors the kernel's bf16-weight / f32-accumulate numerics)
# ----------------------------------------------------------------------------
def ref_forward(x, params):
    h = x.astype(jnp.float32)
    for (w, b), act in zip(params, _ACTS):
        y = jnp.dot(h.astype(jnp.bfloat16), w.astype(jnp.bfloat16),
                    preferred_element_type=jnp.float32) + b
        h = _apply_act(y, act)
    return h


# ----------------------------------------------------------------------------
# main
# ----------------------------------------------------------------------------
if __name__ == "__main__":
    # Small stand-in shapes with the same (ragged) topology as the real model:
    # input_dim -> 1000 -> 500 -> 4400 -> 500 -> 1000 -> input_dim
    batch = 6            # not a multiple of 8 -> exercises sublane padding
    input_dim = 200      # stand-in for gen_expression.shape[1]
    h1 = 250             # stand-in for 1000
    h2 = 120             # stand-in for 500
    hidden_dim = 260     # stand-in for 4400

    layer_dims = [
        (input_dim, h1), (h1, h2), (h2, hidden_dim),      # encoder
        (hidden_dim, h2), (h2, h1), (h1, input_dim),      # decoder
    ]

    key = jax.random.PRNGKey(0)
    key, kx = jax.random.split(key)
    x = jax.random.uniform(kx, (batch, input_dim), jnp.float32)  # expression data in [0,1]

    params = init_params(key, layer_dims)
    prepared = prepare_params(params)

    # 1) default: whole network in one fused VMEM-resident call
    fwd_fused = jax.jit(functools.partial(autoencoder_forward))
    # 2) every layer streamed (full-K, N-tiled weight streaming)
    fwd_layered = jax.jit(functools.partial(autoencoder_forward, force_per_layer=True))
    # 3) hybrid plan with tiny forced budgets: exercises mixed fused/streamed grouping
    #    AND the K-tiled accumulator fallback on the over-budget layers
    fwd_hybrid = jax.jit(functools.partial(
        autoencoder_forward,
        fuse_budget_bytes=300 * 1024,
        weight_tile_budget_bytes=96 * 1024))

    out_fused = jax.block_until_ready(fwd_fused(x, prepared))
    out_layered = jax.block_until_ready(fwd_layered(x, prepared))
    out_hybrid = jax.block_until_ready(fwd_hybrid(x, prepared))

    ref = ref_forward(x, params)

    for name, out in (("fused", out_fused), ("layered", out_layered),
                      ("hybrid", out_hybrid)):
        assert out.shape == (batch, input_dim), name
        err = float(jnp.max(jnp.abs(out - ref)))
        assert err < 2e-3, f"{name} path mismatch: {err}"
    assert bool(jnp.all((out_fused > 0.0) & (out_fused < 1.0)))  # sigmoid range

    print("KERNEL_OK")
</pallas_src>

<mosaic_0001>
module attributes {stable_mosaic.version = 11 : i64} {
  func.func @_fused_group_kernel(%arg0: i32, %arg1: memref<8x256xf32, #tpu.memory_space<vmem>>, %arg2: memref<256x256xbf16, #tpu.memory_space<vmem>>, %arg3: memref<1x256xf32, #tpu.memory_space<vmem>>, %arg4: memref<256x128xbf16, #tpu.memory_space<vmem>>, %arg5: memref<1x128xf32, #tpu.memory_space<vmem>>, %arg6: memref<128x384xbf16, #tpu.memory_space<vmem>>, %arg7: memref<1x384xf32, #tpu.memory_space<vmem>>, %arg8: memref<384x128xbf16, #tpu.memory_space<vmem>>, %arg9: memref<1x128xf32, #tpu.memory_space<vmem>>, %arg10: memref<128x256xbf16, #tpu.memory_space<vmem>>, %arg11: memref<1x256xf32, #tpu.memory_space<vmem>>, %arg12: memref<256x256xbf16, #tpu.memory_space<vmem>>, %arg13: memref<1x256xf32, #tpu.memory_space<vmem>>, %arg14: memref<8x256xf32, #tpu.memory_space<vmem>>) attributes {dimension_semantics = [#tpu.dimension_semantics<parallel>], iteration_bounds = array<i64: 1>, scalar_prefetch = 0 : i64, scratch_operands = 0 : i64, tpu.core_type = #tpu.core_type<tc>, window_params = [{transform_indices = @transform_0, window_bounds = array<i64: 8, 256>}, {pipeline_mode = #tpu.pipeline_mode<synchronous>, transform_indices = @transform_1, window_bounds = array<i64: 256, 256>}, {pipeline_mode = #tpu.pipeline_mode<synchronous>, transform_indices = @transform_2, window_bounds = array<i64: 1, 256>}, {pipeline_mode = #tpu.pipeline_mode<synchronous>, transform_indices = @transform_3, window_bounds = array<i64: 256, 128>}, {pipeline_mode = #tpu.pipeline_mode<synchronous>, transform_indices = @transform_4, window_bounds = array<i64: 1, 128>}, {pipeline_mode = #tpu.pipeline_mode<synchronous>, transform_indices = @transform_5, window_bounds = array<i64: 128, 384>}, {pipeline_mode = #tpu.pipeline_mode<synchronous>, transform_indices = @transform_6, window_bounds = array<i64: 1, 384>}, {pipeline_mode = #tpu.pipeline_mode<synchronous>, transform_indices = @transform_7, window_bounds = array<i64: 384, 128>}, {pipeline_mode = #tpu.pipeline_mode<synchronous>, transform_indices = @transform_8, window_bounds = array<i64: 1, 128>}, {pipeline_mode = #tpu.pipeline_mode<synchronous>, transform_indices = @transform_9, window_bounds = array<i64: 128, 256>}, {pipeline_mode = #tpu.pipeline_mode<synchronous>, transform_indices = @transform_10, window_bounds = array<i64: 1, 256>}, {pipeline_mode = #tpu.pipeline_mode<synchronous>, transform_indices = @transform_11, window_bounds = array<i64: 256, 256>}, {pipeline_mode = #tpu.pipeline_mode<synchronous>, transform_indices = @transform_12, window_bounds = array<i64: 1, 256>}, {transform_indices = @transform_13, window_bounds = array<i64: 8, 256>}]} {
    %c0 = arith.constant 0 : index
    %c0_0 = arith.constant 0 : index
    %0 = vector.load %arg1[%c0, %c0_0] : memref<8x256xf32, #tpu.memory_space<vmem>>, vector<8x256xf32>
    %c0_1 = arith.constant 0 : index
    %c0_2 = arith.constant 0 : index
    %1 = vector.load %arg2[%c0_1, %c0_2] : memref<256x256xbf16, #tpu.memory_space<vmem>>, vector<256x256xbf16>
    %c0_3 = arith.constant 0 : index
    %c0_4 = arith.constant 0 : index
    %2 = vector.load %arg3[%c0_3, %c0_4] : memref<1x256xf32, #tpu.memory_space<vmem>>, vector<1x256xf32>
    %3 = arith.truncf %0 : vector<8x256xf32> to vector<8x256xbf16>
    %cst = arith.constant dense<0.000000e+00> : vector<8x256xf32>
    %4 = tpu.matmul %3, %1, %cst {dimension_numbers = #tpu.dot_dimension_numbers<[1], [0], [0], [1], [0, 0, 1, 1], [], []>} : vector<8x256xbf16>, vector<256x256xbf16>, vector<8x256xf32> -> vector<8x256xf32>
    %5 = vector.broadcast %2 : vector<1x256xf32> to vector<8x256xf32>
    %6 = arith.addf %4, %5 : vector<8x256xf32>
    %cst_5 = arith.constant 0.000000e+00 : f32
    %7 = vector.broadcast %cst_5 : f32 to vector<8x256xf32>
    %8 = arith.maximumf %6, %7 : vector<8x256xf32>
    %c0_6 = arith.constant 0 : index
    %c0_7 = arith.constant 0 : index
    %9 = vector.load %arg4[%c0_6, %c0_7] : memref<256x128xbf16, #tpu.memory_space<vmem>>, vector<256x128xbf16>
    %c0_8 = arith.constant 0 : index
    %c0_9 = arith.constant 0 : index
    %10 = vector.load %arg5[%c0_8, %c0_9] : memref<1x128xf32, #tpu.memory_space<vmem>>, vector<1x128xf32>
    %11 = arith.truncf %8 : vector<8x256xf32> to vector<8x256xbf16>
    %cst_10 = arith.constant dense<0.000000e+00> : vector<8x128xf32>
    %12 = tpu.matmul %11, %9, %cst_10 {dimension_numbers = #tpu.dot_dimension_numbers<[1], [0], [0], [1], [0, 0, 1, 1], [], []>} : vector<8x256xbf16>, vector<256x128xbf16>, vector<8x128xf32> -> vector<8x128xf32>
    %13 = vector.broadcast %10 : vector<1x128xf32> to vector<8x128xf32>
    %14 = arith.addf %12, %13 : vector<8x128xf32>
    %cst_11 = arith.constant 0.000000e+00 : f32
    %15 = vector.broadcast %cst_11 : f32 to vector<8x128xf32>
    %16 = arith.maximumf %14, %15 : vector<8x128xf32>
    %c0_12 = arith.constant 0 : index
    %c0_13 = arith.constant 0 : index
    %17 = vector.load %arg6[%c0_12, %c0_13] : memref<128x384xbf16, #tpu.memory_space<vmem>>, vector<128x384xbf16>
    %c0_14 = arith.constant 0 : index
    %c0_15 = arith.constant 0 : index
    %18 = vector.load %arg7[%c0_14, %c0_15] : memref<1x384xf32, #tpu.memory_space<vmem>>, vector<1x384xf32>
    %19 = arith.truncf %16 : vector<8x128xf32> to vector<8x128xbf16>
    %cst_16 = arith.constant dense<0.000000e+00> : vector<8x384xf32>
    %20 = tpu.matmul %19, %17, %cst_16 {dimension_numbers = #tpu.dot_dimension_numbers<[1], [0], [0], [1], [0, 0, 1, 1], [], []>} : vector<8x128xbf16>, vector<128x384xbf16>, vector<8x384xf32> -> vector<8x384xf32>
    %21 = vector.broadcast %18 : vector<1x384xf32> to vector<8x384xf32>
    %22 = arith.addf %20, %21 : vector<8x384xf32>
    %c0_17 = arith.constant 0 : index
    %c0_18 = arith.constant 0 : index
    %23 = vector.load %arg8[%c0_17, %c0_18] : memref<384x128xbf16, #tpu.memory_space<vmem>>, vector<384x128xbf16>
    %c0_19 = arith.constant 0 : index
    %c0_20 = arith.constant 0 : index
    %24 = vector.load %arg9[%c0_19, %c0_20] : memref<1x128xf32, #tpu.memory_space<vmem>>, vector<1x128xf32>
    %25 = arith.truncf %22 : vector<8x384xf32> to vector<8x384xbf16>
    %cst_21 = arith.constant dense<0.000000e+00> : vector<8x128xf32>
    %26 = tpu.matmul %25, %23, %cst_21 {dimension_numbers = #tpu.dot_dimension_numbers<[1], [0], [0], [1], [0, 0, 1, 1], [], []>} : vector<8x384xbf16>, vector<384x128xbf16>, vector<8x128xf32> -> vector<8x128xf32>
    %27 = vector.broadcast %24 : vector<1x128xf32> to vector<8x128xf32>
    %28 = arith.addf %26, %27 : vector<8x128xf32>
    %cst_22 = arith.constant 0.000000e+00 : f32
    %29 = vector.broadcast %cst_22 : f32 to vector<8x128xf32>
    %30 = arith.maximumf %28, %29 : vector<8x128xf32>
    %c0_23 = arith.constant 0 : index
    %c0_24 = arith.constant 0 : index
    %31 = vector.load %arg10[%c0_23, %c0_24] : memref<128x256xbf16, #tpu.memory_space<vmem>>, vector<128x256xbf16>
    %c0_25 = arith.constant 0 : index
    %c0_26 = arith.constant 0 : index
    %32 = vector.load %arg11[%c0_25, %c0_26] : memref<1x256xf32, #tpu.memory_space<vmem>>, vector<1x256xf32>
    %33 = arith.truncf %30 : vector<8x128xf32> to vector<8x128xbf16>
    %cst_27 = arith.constant dense<0.000000e+00> : vector<8x256xf32>
    %34 = tpu.matmul %33, %31, %cst_27 {dimension_numbers = #tpu.dot_dimension_numbers<[1], [0], [0], [1], [0, 0, 1, 1], [], []>} : vector<8x128xbf16>, vector<128x256xbf16>, vector<8x256xf32> -> vector<8x256xf32>
    %35 = vector.broadcast %32 : vector<1x256xf32> to vector<8x256xf32>
    %36 = arith.addf %34, %35 : vector<8x256xf32>
    %cst_28 = arith.constant 0.000000e+00 : f32
    %37 = vector.broadcast %cst_28 : f32 to vector<8x256xf32>
    %38 = arith.maximumf %36, %37 : vector<8x256xf32>
    %c0_29 = arith.constant 0 : index
    %c0_30 = arith.constant 0 : index
    %39 = vector.load %arg12[%c0_29, %c0_30] : memref<256x256xbf16, #tpu.memory_space<vmem>>, vector<256x256xbf16>
    %c0_31 = arith.constant 0 : index
    %c0_32 = arith.constant 0 : index
    %40 = vector.load %arg13[%c0_31, %c0_32] : memref<1x256xf32, #tpu.memory_space<vmem>>, vector<1x256xf32>
    %41 = arith.truncf %38 : vector<8x256xf32> to vector<8x256xbf16>
    %cst_33 = arith.constant dense<0.000000e+00> : vector<8x256xf32>
    %42 = tpu.matmul %41, %39, %cst_33 {dimension_numbers = #tpu.dot_dimension_numbers<[1], [0], [0], [1], [0, 0, 1, 1], [], []>} : vector<8x256xbf16>, vector<256x256xbf16>, vector<8x256xf32> -> vector<8x256xf32>
    %43 = vector.broadcast %40 : vector<1x256xf32> to vector<8x256xf32>
    %44 = arith.addf %42, %43 : vector<8x256xf32>
    %45 = arith.negf %44 : vector<8x256xf32>
    %46 = math.exp %45 : vector<8x256xf32>
    %cst_34 = arith.constant 1.000000e+00 : f32
    %47 = vector.broadcast %cst_34 : f32 to vector<8x256xf32>
    %48 = arith.addf %47, %46 : vector<8x256xf32>
    %49 = arith.divf %47, %48 : vector<8x256xf32>
    %c0_35 = arith.constant 0 : index
    %c0_36 = arith.constant 0 : index
    %50 = vector.load %arg14[%c0_35, %c0_36] : memref<8x256xf32, #tpu.memory_space<vmem>>, vector<8x256xf32>
    tpu.vector_store %arg14[%c0_35, %c0_36], %49 {strides = array<i32>} : memref<8x256xf32, #tpu.memory_space<vmem>>, vector<8x256xf32>,
    return
  }
  func.func @transform_0(%arg0: i32) -> (i32, i32) {
    %c0_i32 = arith.constant 0 : i32
    %c0_i32_0 = arith.constant 0 : i32
    return %arg0, %c0_i32 : i32, i32
  }
  func.func @transform_1(%arg0: i32) -> (i32, i32) {
    %c0_i32 = arith.constant 0 : i32
    %c0_i32_0 = arith.constant 0 : i32
    %c0_i32_1 = arith.constant 0 : i32
    return %c0_i32, %c0_i32_0 : i32, i32
  }
  func.func @transform_2(%arg0: i32) -> (i32, i32) {
    %c0_i32 = arith.constant 0 : i32
    %c0_i32_0 = arith.constant 0 : i32
    %c0_i32_1 = arith.constant 0 : i32
    return %c0_i32, %c0_i32_0 : i32, i32
  }
  func.func @transform_3(%arg0: i32) -> (i32, i32) {
    %c0_i32 = arith.constant 0 : i32
    %c0_i32_0 = arith.constant 0 : i32
    %c0_i32_1 = arith.constant 0 : i32
    return %c0_i32, %c0_i32_0 : i32, i32
  }
  func.func @transform_4(%arg0: i32) -> (i32, i32) {
    %c0_i32 = arith.constant 0 : i32
    %c0_i32_0 = arith.constant 0 : i32
    %c0_i32_1 = arith.constant 0 : i32
    return %c0_i32, %c0_i32_0 : i32, i32
  }
  func.func @transform_5(%arg0: i32) -> (i32, i32) {
    %c0_i32 = arith.constant 0 : i32
    %c0_i32_0 = arith.constant 0 : i32
    %c0_i32_1 = arith.constant 0 : i32
    return %c0_i32, %c0_i32_0 : i32, i32
  }
  func.func @transform_6(%arg0: i32) -> (i32, i32) {
    %c0_i32 = arith.constant 0 : i32
    %c0_i32_0 = arith.constant 0 : i32
    %c0_i32_1 = arith.constant 0 : i32
    return %c0_i32, %c0_i32_0 : i32, i32
  }
  func.func @transform_7(%arg0: i32) -> (i32, i32) {
    %c0_i32 = arith.constant 0 : i32
    %c0_i32_0 = arith.constant 0 : i32
    %c0_i32_1 = arith.constant 0 : i32
    return %c0_i32, %c0_i32_0 : i32, i32
  }
  func.func @transform_8(%arg0: i32) -> (i32, i32) {
    %c0_i32 = arith.constant 0 : i32
    %c0_i32_0 = arith.constant 0 : i32
    %c0_i32_1 = arith.constant 0 : i32
    return %c0_i32, %c0_i32_0 : i32, i32
  }
  func.func @transform_9(%arg0: i32) -> (i32, i32) {
    %c0_i32 = arith.constant 0 : i32
    %c0_i32_0 = arith.constant 0 : i32
    %c0_i32_1 = arith.constant 0 : i32
    return %c0_i32, %c0_i32_0 : i32, i32
  }
  func.func @transform_10(%arg0: i32) -> (i32, i32) {
    %c0_i32 = arith.constant 0 : i32
    %c0_i32_0 = arith.constant 0 : i32
    %c0_i32_1 = arith.constant 0 : i32
    return %c0_i32, %c0_i32_0 : i32, i32
  }
  func.func @transform_11(%arg0: i32) -> (i32, i32) {
    %c0_i32 = arith.constant 0 : i32
    %c0_i32_0 = arith.constant 0 : i32
    %c0_i32_1 = arith.constant 0 : i32
    return %c0_i32, %c0_i32_0 : i32, i32
  }
  func.func @transform_12(%arg0: i32) -> (i32, i32) {
    %c0_i32 = arith.constant 0 : i32
    %c0_i32_0 = arith.constant 0 : i32
    %c0_i32_1 = arith.constant 0 : i32
    return %c0_i32, %c0_i32_0 : i32, i32
  }
  func.func @transform_13(%arg0: i32) -> (i32, i32) {
    %c0_i32 = arith.constant 0 : i32
    %c0_i32_0 = arith.constant 0 : i32
    return %arg0, %c0_i32 : i32, i32
  }
}

</mosaic_0001>

<bundles_post_ra>
// kernel: autoencoder_forward.1
= control target key start
LH: loop header
LB: loop body
LE: loop exit
PB: predicated region body
PF: predicated region fallthrough
CT: control target
= control target key end

     0   :  { %18 = vsyncpa [#allocation3], 0  ;;  %s2323_s0 = inlined_call_operand.vmem [shape: f32[8,256], index: 0, kind: input, shape index: {}]   ;;  %s2324_s1 = inlined_call_operand.hbm [shape: bf16[256,256], index: 1, kind: input, shape index: {}]   ;;  %s2325_s2 = inlined_call_operand.vmem [shape: f32[1,256], index: 2, kind: input, shape index: {}]   ;;  %s2326_s3 = inlined_call_operand.hbm [shape: bf16[256,128], index: 3, kind: input, shape index: {}]   ;;  %s2327_s4 = inlined_call_operand.vmem [shape: f32[1,128], index: 4, kind: input, shape index: {}]   ;;  %s2328_s5 = inlined_call_operand.hbm [shape: bf16[128,384], index: 5, kind: input, shape index: {}]   ;;  %s2329_s6 = inlined_call_operand.vmem [shape: f32[1,384], index: 6, kind: input, shape index: {}]   ;;  %s2330_s7 = inlined_call_operand.hbm [shape: bf16[384,128], index: 7, kind: input, shape index: {}]   ;;  %s2331_s8 = inlined_call_operand.vmem [shape: f32[1,128], index: 8, kind: input, shape index: {}]   ;;  %s2332_s9 = inlined_call_operand.hbm [shape: bf16[128,256], index: 9, kind: input, shape index: {}]   ;;  %s2333_s10 = inlined_call_operand.vmem [shape: f32[1,256], index: 10, kind: input, shape index: {}]   ;;  %s2334_s11 = inlined_call_operand.hbm [shape: bf16[256,256], index: 11, kind: input, shape index: {}]   ;;  %s2335_s12 = inlined_call_operand.vmem [shape: f32[1,256], index: 12, kind: input, shape index: {}]   ;;  %s2336_s13 = inlined_call_operand.hbm [shape: f32[8,256], index: 13, kind: output, shape index: {}]  }
   0x1   :  { %19 = vsyncpa [#allocation6], 0 }
   0x2   :  { %20 = vsyncpa [#allocation9], 0 }
   0x3   :  { %21 = vsyncpa [#allocation12], 0 }
   0x4   :  { %22 = vsyncpa [#allocation4], 0  ;;  %s2146_s25 = smov [#allocation5]  }
   0x5   :  { %s44_s26 = sshll.u32 %s2146_s25, 4  ;;  %s45_s26 = int_to_ptr.vmem [resolvable:$true] %s44_s26 }
   0x6   :  { %s2004_s27 = scalar_lea.vmem %s45_s26, 2048  ;;  %p2009_p1 = scmp.lt.s32.totalorder %s45_s26, %s45_s26 }
   0x7   :  { %p2005_p0 = scmp.ne.s32.totalorder %s45_s26, %s2004_s27  ;;  %p2010_p2 = scmp.lt.s32.totalorder %s2004_s27, %s2004_s27 }
   0x9   :  { %p2011_p3 = por %p2010_p2, %p2009_p1 }
   0xb   :  { %p2012_p4 = pnand %p2011_p3, %p2005_p0 }
   0xd   :  { %2015 = shalt.err (!%p2012_p4)
}
   0xe   :  { %s2147_s28 = smov 64   ;;  %s2148_s29 = smov 4  }
   0xf   :  { %50 = dma.hbm_to_vmem [thread:$0]  %s2326_s3, 2048, %s45_s26, [#allocation6], %s2147_s28, %s2147_s28, %s2148_s29  }
  0x10   :  { %s2149_s15 = smov [#allocation8]   ;;  %s2150_s17 = smov [#allocation2]  }
  0x11   :  { %s72_s16 = sshll.u32 %s2149_s15, 4  ;;  %s30_s18 = sshll.u32 %s2150_s17, 4  ;;  %s73_s16 = int_to_ptr.vmem [resolvable:$true] %s72_s16  ;;  %s31_s18 = int_to_ptr.vmem [resolvable:$true] %s30_s18 }
  0x12   :  { %s2024_s19 = scalar_lea.vmem %s73_s16, 3072  ;;  %p2029_p6 = scmp.lt.s32.totalorder %s73_s16, %s73_s16 }
  0x13   :  { %p2025_p5 = scmp.ne.s32.totalorder %s73_s16, %s2024_s19  ;;  %p2030_p7 = scmp.lt.s32.totalorder %s2024_s19, %s2024_s19 }
  0x15   :  { %p2031_p8 = por %p2030_p7, %p2029_p6 }
  0x17   :  { %p2032_p9 = pnand %p2031_p8, %p2025_p5 }
  0x19   :  { %2035 = shalt.err (!%p2032_p9)
}
  0x1a   :  { %78 = dma.hbm_to_vmem [thread:$0]  %s2330_s7, 3072, %s73_s16, [#allocation9], %s2147_s28, %s2147_s28, %s2148_s29  }
  0x1b   :  { %s2044_s22 = scalar_lea.vmem %s31_s18, 4096  ;;  %p2049_p11 = scmp.lt.s32.totalorder %s31_s18, %s31_s18 }
  0x1c   :  { %p2045_p10 = scmp.ne.s32.totalorder %s31_s18, %s2044_s22  ;;  %p2050_p12 = scmp.lt.s32.totalorder %s2044_s22, %s2044_s22 }
  0x1e   :  { %p2051_p13 = por %p2050_p12, %p2049_p11 }
  0x20   :  { %p2052_p0 = pnand %p2051_p13, %p2045_p10 }
  0x22   :  { %2055 = shalt.err (!%p2052_p0)
}
  0x23   :  { %s2151_s3 = smov 128   ;;  %s2152_s23 = smov 8  }
  0x24   :  { %36 = dma.hbm_to_vmem [thread:$0]  %s2324_s1, 4096, %s31_s18, [#allocation3], %s2151_s3, %s2151_s3, %s2152_s23  }
  0x25   :  { %s2153_s26 = smov [#allocation7]  }
  0x26   :  { %s58_s27 = sshll.u32 %s2153_s26, 4  ;;  %s59_s27 = int_to_ptr.vmem [resolvable:$true] %s58_s27 }
  0x27   :  { %s2064_s7 = scalar_lea.vmem %s59_s27, 3072  ;;  %p2069_p2 = scmp.lt.s32.totalorder %s59_s27, %s59_s27 }
  0x28   :  { %p2065_p1 = scmp.ne.s32.totalorder %s59_s27, %s2064_s7  ;;  %p2070_p3 = scmp.lt.s32.totalorder %s2064_s7, %s2064_s7 }
  0x2a   :  { %p2071_p4 = por %p2070_p3, %p2069_p2 }
  0x2c   :  { %p2072_p5 = pnand %p2071_p4, %p2065_p1 }
  0x2e   :  { %2075 = shalt.err (!%p2072_p5)
}
  0x2f   :  { %s2154_s28 = smov 192   ;;  %s2155_s29 = smov 12  }
  0x30   :  { %64 = dma.hbm_to_vmem [thread:$0]  %s2328_s5, 3072, %s59_s27, [#allocation6], %s2154_s28, %s2154_s28, %s2155_s29  }
  0x31   :  { %s2156_s15 = smov [#allocation10]   ;;  %s2157_s17 = smov [#allocation11]  }
  0x32   :  { %s86_s16 = sshll.u32 %s2156_s15, 4  ;;  %s100_s1 = sshll.u32 %s2157_s17, 4  ;;  %s87_s16 = int_to_ptr.vmem [resolvable:$true] %s86_s16  ;;  %s101_s1 = int_to_ptr.vmem [resolvable:$true] %s100_s1 }
  0x33   :  { %s2084_s18 = scalar_lea.vmem %s87_s16, 2048  ;;  %p2089_p7 = scmp.lt.s32.totalorder %s87_s16, %s87_s16 }
  0x34   :  { %p2085_p6 = scmp.ne.s32.totalorder %s87_s16, %s2084_s18  ;;  %p2090_p8 = scmp.lt.s32.totalorder %s2084_s18, %s2084_s18 }
  0x36   :  { %p2091_p9 = por %p2090_p8, %p2089_p7 }
  0x38   :  { %p2092_p10 = pnand %p2091_p9, %p2085_p6 }
  0x3a   :  { %2095 = shalt.err (!%p2092_p10)
}
  0x3b   :  { %92 = dma.hbm_to_vmem [thread:$0]  %s2332_s9, 2048, %s87_s16, [#allocation9], %s2151_s3, %s2151_s3, %s2152_s23  }
  0x3c   :  { %s2104_s5 = scalar_lea.vmem %s101_s1, 4096  ;;  %p2109_p12 = scmp.lt.s32.totalorder %s101_s1, %s101_s1 }
  0x3d   :  { %p2105_p11 = scmp.ne.s32.totalorder %s101_s1, %s2104_s5  ;;  %p2110_p13 = scmp.lt.s32.totalorder %s2104_s5, %s2104_s5 }
  0x3f   :  { %p2111_p0 = por %p2110_p13, %p2109_p12 }
  0x41   :  { %p2112_p1 = pnand %p2111_p0, %p2105_p11 }
  0x43   :  { %2115 = shalt.err (!%p2112_p1)
}
  0x44   :  { %106 = dma.hbm_to_vmem [thread:$0]  %s2334_s11, 4096, %s101_s1, [#allocation12], %s2151_s3, %s2151_s3, %s2152_s23  }
  0x45   :  { %2136 = dma.done.wait [#allocation3], 4096  }
  0x46   :  { %2137 = vsyncadd [#allocation3], 4294963200 }
  0x47   :  { %2138 = dma.done.wait [#allocation6], 5120  }
  0x48   :  { %2139 = vsyncadd [#allocation6], 4294962176 }
  0x49   :  { %2140 = dma.done.wait [#allocation9], 5120  }
  0x4a   :  { %2141 = vsyncadd [#allocation9], 4294962176 }
  0x4b   :  { %2142 = dma.done.wait [#allocation12], 4096  }
  0x4c   :  { %2143 = vsyncadd [#allocation12], 4294963200  ;;  %v1796_v0 = vld [vmem:[#allocation2 + $0x74] ss:$8 sps:$4 sm:$0xff]   ;;  %v1798_v1 = vld [vmem:[#allocation2 + $0x70] ss:$8 sps:$4 sm:$0xff]   ;;  %v166_v53 = vlaneseq }
  0x4d   :  { %336 = vmatprep.subr.bf16.mxu0 %v1796_v0  ;;  %v1799_v2 = vld [vmem:[#allocation2 + $0x64] ss:$8 sps:$4 sm:$0xff]   ;;  %v1801_v3 = vld [vmem:[#allocation2 + $0x60] ss:$8 sps:$4 sm:$0xff]   ;;  %v1802_v4 = vld [vmem:[#allocation2 + $0x54] ss:$8 sps:$4 sm:$0xff]  }
  0x4e   :  { %337 = vmatpush1.bf16.msra.mxu0 %v1798_v1  ;;  %v1804_v5 = vld [vmem:[#allocation2 + $0x50] ss:$8 sps:$4 sm:$0xff]   ;;  %v1805_v6 = vld [vmem:[#allocation2 + $0x44] ss:$8 sps:$4 sm:$0xff]   ;;  %v1807_v7 = vld [vmem:[#allocation2 + $0x40] ss:$8 sps:$4 sm:$0xff]  }
  0x4f   :  { %338 = vmatprep.subr.bf16.mxu0 %v1799_v2  ;;  %v1808_v8 = vld [vmem:[#allocation2 + $0x34] ss:$8 sps:$4 sm:$0xff]   ;;  %v1810_v9 = vld [vmem:[#allocation2 + $0x30] ss:$8 sps:$4 sm:$0xff]   ;;  %v1811_v10 = vld [vmem:[#allocation2 + $0x24] ss:$8 sps:$4 sm:$0xff]  }
  0x50   :  { %v1813_v11 = vld [vmem:[#allocation2 + $0x20] ss:$8 sps:$4 sm:$0xff]   ;;  %v1814_v12 = vld [vmem:[#allocation2 + $0x14] ss:$8 sps:$4 sm:$0xff]   ;;  %v1816_v13 = vld [vmem:[#allocation2 + $0x10] ss:$8 sps:$4 sm:$0xff]  }
  0x51   :  { %v129_v14 = vld [vmem:[%s2323_s0 + $0x8] sm:$0xff]  ;;  %v1844_v17 = vld [vmem:[#allocation5 + $0x78] sm:$0xff]   ;;  %v1846_v19 = vld [vmem:[#allocation5 + $0x70] sm:$0xff]   ;;  %v2265_v54 = vshrl.u32 %v166_v53, 7  ;;  %vm2160_vm0 = vmmov 0  }
  0x52   :  { %339 = vmatpush1.bf16.msra.mxu0 %v1801_v3  ;;  %v1817_v15 = vld [vmem:[#allocation2 + $0x4] ss:$8 sps:$4 sm:$0xff]   ;;  %v164_v16 = vpack.c.bf16 %v129_v14, %v129_v14  ;;  %v1845_v18 = vld [vmem:[#allocation5 + $0x38] sm:$0xff]   ;;  %v1819_v20 = vld [vmem:[#allocation2] ss:$8 sps:$4 sm:$0xff]   ;;  %1678 = vmatprep.subr.bf16.mxu1 %v1844_v17 }
  0x53   :  { %340 = vmatprep.subr.bf16.mxu0 %v1802_v4  ;;  %1679 = vmatpush3.bf16.msra.mxu1 %v1845_v18  ;;  %v1847_v21 = vld [vmem:[#allocation5 + $0x30] sm:$0xff]   ;;  %v1848_v22 = vld [vmem:[#allocation5 + $0x68] sm:$0xff]   ;;  %v1850_v26 = vld [vmem:[#allocation5 + $0x60] sm:$0xff]   ;;  %v2268_v55 = vsub.s32 0, %v2265_v54  ;;  %v2274_v57 = vsub.s32 1, %v2265_v54 }
  0x54   :  { %368 = vmatprep.mubr.bf16.mxu0 %v164_v16  ;;  %1680 = vmatprep.subr.bf16.mxu1 %v1846_v19  ;;  %v1820_v23 = vld [vmem:[#allocation2 + $0xf4] ss:$8 sps:$4 sm:$0xff]   ;;  %v1822_v24 = vld [vmem:[#allocation2 + $0xf0] ss:$8 sps:$4 sm:$0xff]   ;;  %v1849_v25 = vld [vmem:[#allocation5 + $0x28] sm:$0xff]  }
  0x55   :  { %v1823_v27 = vld [vmem:[#allocation2 + $0xe4] ss:$8 sps:$4 sm:$0xff]   ;;  %v1825_v28 = vld [vmem:[#allocation2 + $0xe0] ss:$8 sps:$4 sm:$0xff]   ;;  %v1826_v30 = vld [vmem:[#allocation2 + $0xd4] ss:$8 sps:$4 sm:$0xff]  }
  0x56   :  { %341 = vmatpush1.bf16.msra.mxu0 %v1804_v5  ;;  %v1851_v29 = vld [vmem:[#allocation5 + $0x20] sm:$0xff]   ;;  %v1852_v31 = vld [vmem:[#allocation5 + $0x58] sm:$0xff]   ;;  %v1854_v34 = vld [vmem:[#allocation5 + $0x50] sm:$0xff]  }
  0x57   :  { %342 = vmatprep.subr.bf16.mxu0 %v1805_v6  ;;  %1681 = vmatpush3.bf16.msra.mxu1 %v1847_v21  ;;  %v1853_v32 = vld [vmem:[#allocation5 + $0x18] sm:$0xff]   ;;  %v1829_v35 = vld [vmem:[#allocation2 + $0xc4] ss:$8 sps:$4 sm:$0xff]   ;;  %v1855_v36 = vld [vmem:[#allocation5 + $0x10] sm:$0xff]   ;;  %v2158_v21 = vmov 0  }
  0x58   :  { %1682 = vmatprep.subr.bf16.mxu1 %v1848_v22  ;;  %v1828_v33 = vld [vmem:[#allocation2 + $0xd0] ss:$8 sps:$4 sm:$0xff]   ;;  %v1831_v37 = vld [vmem:[#allocation2 + $0xc0] ss:$8 sps:$4 sm:$0xff]   ;;  %v1832_v38 = vld [vmem:[#allocation2 + $0xb4] ss:$8 sps:$4 sm:$0xff]  }
  0x59   :  { %v1834_v39 = vld [vmem:[#allocation2 + $0xb0] ss:$8 sps:$4 sm:$0xff]   ;;  %v1835_v40 = vld [vmem:[#allocation2 + $0xa4] ss:$8 sps:$4 sm:$0xff]   ;;  %v1837_v41 = vld [vmem:[#allocation2 + $0xa0] ss:$8 sps:$4 sm:$0xff]  }
  0x5a   :  { %343 = vmatpush1.bf16.msra.mxu0 %v1807_v7  ;;  %v1838_v42 = vld [vmem:[#allocation2 + $0x94] ss:$8 sps:$4 sm:$0xff]   ;;  %v1840_v43 = vld [vmem:[#allocation2 + $0x90] ss:$8 sps:$4 sm:$0xff]   ;;  %v1841_v44 = vld [vmem:[#allocation2 + $0x84] ss:$8 sps:$4 sm:$0xff]  }
  0x5b   :  { %344 = vmatprep.subr.bf16.mxu0 %v1808_v8  ;;  %1683 = vmatpush3.bf16.msra.mxu1 %v1849_v25  ;;  %v1843_v45 = vld [vmem:[#allocation2 + $0x80] ss:$8 sps:$4 sm:$0xff]   ;;  %v1862_v52 = vld [vmem:[#allocation7 + $0xac] ss:$12 sps:$4 sm:$0xff]   ;;  %v1863_v8 = vld [vmem:[#allocation7 + $0x90] ss:$12 sps:$4 sm:$0xff]  }
  0x5c   :  { %1684 = vmatprep.subr.bf16.mxu1 %v1850_v26  ;;  %v128_v46 = vld [vmem:[%s2323_s0] sm:$0xff]  ;;  %v1856_v48 = vld [vmem:[#allocation5 + $0x48] sm:$0xff]   ;;  %v1875_v16 = vld [vmem:[#allocation7 + $0x30] ss:$12 sps:$4 sm:$0xff]   ;;  %v2159_v22 = vmov 0.0  }
  0x5d   :  { %v163_v47 = vpack.c.bf16 %v128_v46, %v128_v46  ;;  %v1857_v49 = vld [vmem:[#allocation5 + $0x8] sm:$0xff]   ;;  %v1858_v50 = vld [vmem:[#allocation5 + $0x40] sm:$0xff]  }
  0x5e   :  { %345 = vmatpush1.bf16.msra.mxu0 %v1810_v9  ;;  %v1859_v51 = vld [vmem:[#allocation5] sm:$0xff]   ;;  %v1860_v5 = vld [vmem:[#allocation7 + $0xa8] ss:$12 sps:$4 sm:$0xff]  }
  0x5f   :  { %346 = vmatprep.subr.bf16.mxu0 %v1811_v10  ;;  %1685 = vmatpush3.bf16.msra.mxu1 %v1851_v29  ;;  %v162_v56 = vld [vmem:[%s2325_s2] sm:$0x3]  ;;  %v1868_v9 = vld [vmem:[#allocation7 + $0x7c] ss:$12 sps:$4 sm:$0xff]   ;;  %v1866_v10 = vld [vmem:[#allocation7 + $0x78] ss:$12 sps:$4 sm:$0xff]  }
  0x60   :  { %1686 = vmatprep.subr.bf16.mxu1 %v1852_v31  ;;  %v169_v58 = vrot.slane %v162_v56, %v2268_v55  ;;  %v173_v59 = vrot.slane %v162_v56, %v2274_v57  ;;  %v1865_v7 = vld [vmem:[#allocation7 + $0x94] ss:$12 sps:$4 sm:$0xff]   ;;  %v1880_v17 = vld [vmem:[#allocation7 + $0x1c] ss:$12 sps:$4 sm:$0xff]   ;;  %v1878_v18 = vld [vmem:[#allocation7 + $0x18] ss:$12 sps:$4 sm:$0xff]  }
  0x61   :  { %v1872_v14 = vld [vmem:[#allocation7 + $0x48] ss:$12 sps:$4 sm:$0xff]   ;;  %v1883_v19 = vld [vmem:[#allocation7 + $0x4] ss:$12 sps:$4 sm:$0xff]  }
  0x62   :  { %347 = vmatpush1.bf16.msra.mxu0 %v1813_v11  ;;  %v1871_v11 = vld [vmem:[#allocation7 + $0x64] ss:$12 sps:$4 sm:$0xff]   ;;  %v1905_v53 = vld [vmem:[#allocation8 + $0x8] sm:$0xff]  }
  0x63   :  { %348 = vmatprep.subr.bf16.mxu0 %v1814_v12  ;;  %1687 = vmatpush3.bf16.msra.mxu1 %v1853_v32  ;;  %v1869_v12 = vld [vmem:[#allocation7 + $0x60] ss:$12 sps:$4 sm:$0xff]   ;;  %v1884_v31 = vld [vmem:[#allocation7 + $0xb0] ss:$12 sps:$4 sm:$0xff]  }
  0x64   :  { %1688 = vmatprep.subr.bf16.mxu1 %v1854_v34  ;;  %v1886_v34 = vld [vmem:[#allocation7 + $0x80] ss:$12 sps:$4 sm:$0xff]  }
  0x65   :  { %v1898_v46 = vld [vmem:[#allocation8 + $0x60] sm:$0xff]  }
  0x66   :  { %349 = vmatpush1.bf16.msra.mxu0 %v1816_v13  ;;  %v1874_v13 = vld [vmem:[#allocation7 + $0x4c] ss:$12 sps:$4 sm:$0xff]   ;;  %v1906_v56 = vld [vmem:[#allocation8 + $0x40] sm:$0xff]  }
  0x67   :  { %350 = vmatprep.subr.bf16.mxu0 %v1817_v15  ;;  %1689 = vmatpush3.bf16.msra.mxu1 %v1855_v36  ;;  %v1877_v15 = vld [vmem:[#allocation7 + $0x34] ss:$12 sps:$4 sm:$0xff]   ;;  %v1888_v36 = vld [vmem:[#allocation7 + $0x50] ss:$12 sps:$4 sm:$0xff]  }
  0x68   :  { %1690 = vmatprep.subr.bf16.mxu1 %v1856_v48  ;;  %v1900_v48 = vld [vmem:[#allocation8 + $0x58] sm:$0xff]  }
  0x6a   :  { %351 = vmatpush1.bf16.msra.mxu0 %v1819_v20  ;;  %v1881_v20 = vld [vmem:[#allocation7] ss:$12 sps:$4 sm:$0xff]  }
  0x6b   :  { %352 = vmatprep.subr.bf16.mxu0 %v1820_v23  ;;  %1691 = vmatpush3.bf16.msra.mxu1 %v1857_v49  ;;  %v1901_v49 = vld [vmem:[#allocation8 + $0x18] sm:$0xff]  }
  0x6c   :  { %1692 = vmatprep.subr.bf16.mxu1 %v1858_v50  ;;  %v1902_v50 = vld [vmem:[#allocation8 + $0x50] sm:$0xff]  }
  0x6e   :  { %353 = vmatpush2.bf16.msra.mxu0 %v1822_v24  ;;  %v1562_v24 = vld [vmem:[%s2327_s4] ss:$0 sm:$0xff] }
  0x6f   :  { %354 = vmatprep.subr.bf16.mxu0 %v1823_v27  ;;  %1693 = vmatpush3.bf16.msra.mxu1 %v1859_v51  ;;  %v1903_v51 = vld [vmem:[#allocation8 + $0x10] sm:$0xff]  }
  0x70   :  { %735 = vmatprep.subr.bf16.mxu1 %v1862_v52  ;;  %v1904_v52 = vld [vmem:[#allocation8 + $0x48] sm:$0xff]  }
  0x72   :  { %355 = vmatpush2.bf16.msra.mxu0 %v1825_v28 }
  0x73   :  { %356 = vmatprep.subr.bf16.mxu0 %v1826_v30 }
  0x76   :  { %357 = vmatpush2.bf16.msra.mxu0 %v1828_v33  ;;  %v1885_v33 = vld [vmem:[#allocation7 + $0x98] ss:$12 sps:$4 sm:$0xff]  }
  0x77   :  { %358 = vmatprep.subr.bf16.mxu0 %v1829_v35  ;;  %v1887_v35 = vld [vmem:[#allocation7 + $0x68] ss:$12 sps:$4 sm:$0xff]  }
  0x7a   :  { %359 = vmatpush2.bf16.msra.mxu0 %v1831_v37  ;;  %v1889_v37 = vld [vmem:[#allocation7 + $0x38] ss:$12 sps:$4 sm:$0xff]  }
  0x7b   :  { %360 = vmatprep.subr.bf16.mxu0 %v1832_v38  ;;  %v1890_v38 = vld [vmem:[#allocation7 + $0x20] ss:$12 sps:$4 sm:$0xff]  }
  0x7e   :  { %361 = vmatpush2.bf16.msra.mxu0 %v1834_v39  ;;  %v1891_v39 = vld [vmem:[#allocation7 + $0x8] ss:$12 sps:$4 sm:$0xff]  }
  0x7f   :  { %362 = vmatprep.subr.bf16.mxu0 %v1835_v40  ;;  %v1892_v40 = vld [vmem:[#allocation8 + $0x78] sm:$0xff]  }
  0x82   :  { %363 = vmatpush2.bf16.msra.mxu0 %v1837_v41  ;;  %v1893_v41 = vld [vmem:[#allocation8 + $0x38] sm:$0xff]  }
  0x83   :  { %364 = vmatprep.subr.bf16.mxu0 %v1838_v42  ;;  %v1894_v42 = vld [vmem:[#allocation8 + $0x70] sm:$0xff]  }
  0x86   :  { %365 = vmatpush2.bf16.msra.mxu0 %v1840_v43  ;;  %v1895_v43 = vld [vmem:[#allocation8 + $0x30] sm:$0xff]  }
  0x87   :  { %366 = vmatprep.subr.bf16.mxu0 %v1841_v44  ;;  %v1896_v44 = vld [vmem:[#allocation8 + $0x68] sm:$0xff]  }
  0x8a   :  { %367 = vmatpush2.bf16.msra.mxu0 %v1843_v45  ;;  %v1897_v45 = vld [vmem:[#allocation8 + $0x28] sm:$0xff]  }
  0x8b   :  { %1760 = vmatprep.subr.bf16.mxu0 %v2159_v22 }
  0x8d   :  { %369 = vmatmul.mubr.bf16.vlgmr.msra.gmra.mxu0 %v163_v47  ;;  %v1899_v47 = vld [vmem:[#allocation8 + $0x20] sm:$0xff]  }
  0x8e   :  { %1776 = vmatprep.mubr.msk.bf16.mxu0 %vm2160_vm0, %v2159_v22 }
 0x14d   :  { %v370_v60 = vpop.f32.mrf.mxu0 }
 0x14e   :  { %v371_v61 = vadd.f32 %v370_v60, %v169_v58  ;;  %v1907_v58 = vld [vmem:[#allocation8] sm:$0xff]   ;;  %v1909_v60 = vld [vmem:[#allocation8 + $0xb0] sm:$0xff]  }
 0x14f   :  { %v372_v62 = vpop.f32.mrf.mxu0 }
 0x150   :  { %v373_v63 = vadd.f32 %v372_v62, %v173_v59  ;;  %v377_v0 = vmax.f32 %v371_v61, 0.0  ;;  %v1908_v59 = vld [vmem:[#allocation8 + $0xb8] sm:$0xff]   ;;  %v1910_v61 = vld [vmem:[#allocation8 + $0xa8] sm:$0xff]   ;;  %v1911_v62 = vld [vmem:[#allocation8 + $0xa0] sm:$0xff]  }
 0x151   :  { %v374_v1 = vpop.f32.mrf.mxu0  ;;  %1761 = vmatpush3.bf16.msra.mxu0 %v1908_v59  ;;  %v1967_v59 = vld [vmem:[#allocation11 + $0xe0] ss:$8 sps:$4 sm:$0xff]  }
 0x152   :  { %v378_v2 = vmax.f32 %v373_v63, 0.0  ;;  %v412_v6 = vpack.c.bf16 %v377_v0, %v377_v0  ;;  %1762 = vmatprep.subr.bf16.mxu0 %v2159_v22  ;;  %v1912_v63 = vld [vmem:[#allocation8 + $0x98] sm:$0xff]   ;;  %v1913_v0 = vld [vmem:[#allocation8 + $0x90] sm:$0xff]   ;;  %v1914_v1 = vld [vmem:[#allocation8 + $0x88] sm:$0xff]  }
 0x153   :  { %v375_v3 = vpop.f32.mrf.mxu0 }
 0x154   :  { %v413_v4 = vpack.c.bf16 %v378_v2, %v378_v2  ;;  %v1915_v2 = vld [vmem:[#allocation8 + $0x80] sm:$0xff]  }
 0x155   :  { %1763 = vmatpush3.bf16.msra.mxu0 %v1909_v60  ;;  %v589_v3 = vld [vmem:[%s2329_s6] sm:$0x7]  ;;  %v1972_v60 = vld [vmem:[#allocation11 + $0xd4] ss:$8 sps:$4 sm:$0xff]  }
 0x156   :  { %548 = vmatprep.mubr.bf16.mxu1 %v413_v4  ;;  %1764 = vmatprep.subr.bf16.mxu0 %v2159_v22  ;;  %v595_v4 = vrot.slane %v589_v3, %v2268_v55 }
 0x157   :  { %549 = vmatmul.mubr.bf16.vlgmr.msra.gmra.mxu1 %v412_v6 }
 0x158   :  { %736 = vmatpush1.bf16.msra.mxu1 %v1860_v5  ;;  %767 = vmatprep.mubr.bf16.mxu1 %v2158_v21  ;;  %v599_v5 = vrot.slane %v589_v3, %v2274_v57 }
 0x159   :  { %737 = vmatprep.subr.bf16.mxu1 %v1865_v7  ;;  %1765 = vmatpush3.bf16.msra.mxu0 %v1910_v61  ;;  %v1970_v61 = vld [vmem:[#allocation11 + $0xd0] ss:$8 sps:$4 sm:$0xff]  }
 0x15a   :  { %1766 = vmatprep.subr.bf16.mxu0 %v2159_v22 }
 0x15c   :  { %738 = vmatpush1.bf16.msra.mxu1 %v1863_v8 }
 0x15d   :  { %739 = vmatprep.subr.bf16.mxu1 %v1868_v9  ;;  %1767 = vmatpush3.bf16.msra.mxu0 %v1911_v62  ;;  %v1975_v62 = vld [vmem:[#allocation11 + $0xc4] ss:$8 sps:$4 sm:$0xff]  }
 0x15e   :  { %1768 = vmatprep.subr.bf16.mxu0 %v2159_v22 }
 0x160   :  { %740 = vmatpush1.bf16.msra.mxu1 %v1866_v10 }
 0x161   :  { %741 = vmatprep.subr.bf16.mxu1 %v1871_v11  ;;  %1769 = vmatpush3.bf16.msra.mxu0 %v1912_v63  ;;  %v1973_v63 = vld [vmem:[#allocation11 + $0xc0] ss:$8 sps:$4 sm:$0xff]  }
 0x162   :  { %1770 = vmatprep.subr.bf16.mxu0 %v2159_v22 }
 0x164   :  { %742 = vmatpush1.bf16.msra.mxu1 %v1869_v12 }
 0x165   :  { %743 = vmatprep.subr.bf16.mxu1 %v1874_v13  ;;  %1771 = vmatpush3.bf16.msra.mxu0 %v1913_v0  ;;  %v1978_v0 = vld [vmem:[#allocation11 + $0xb4] ss:$8 sps:$4 sm:$0xff]  }
 0x166   :  { %1772 = vmatprep.subr.bf16.mxu0 %v2159_v22 }
 0x168   :  { %744 = vmatpush1.bf16.msra.mxu1 %v1872_v14  ;;  %v602_v14 = vsub.s32 2, %v2265_v54  ;;  %v1927_v54 = vld [vmem:[#allocation10 + $0x44] ss:$8 sps:$4 sm:$0xff]  }
 0x169   :  { %745 = vmatprep.subr.bf16.mxu1 %v1877_v15  ;;  %1773 = vmatpush3.bf16.msra.mxu0 %v1914_v1  ;;  %v1976_v1 = vld [vmem:[#allocation11 + $0xb0] ss:$8 sps:$4 sm:$0xff]  }
 0x16a   :  { %1774 = vmatprep.subr.bf16.mxu0 %v2159_v22  ;;  %v603_v15 = vrot.slane %v589_v3, %v602_v14  ;;  %v1979_v3 = vld [vmem:[#allocation11 + $0xa0] ss:$8 sps:$4 sm:$0xff]  }
 0x16c   :  { %746 = vmatpush1.bf16.msra.mxu1 %v1875_v16 }
 0x16d   :  { %747 = vmatprep.subr.bf16.mxu1 %v1880_v17  ;;  %1775 = vmatpush3.bf16.msra.mxu0 %v1915_v2  ;;  %v1981_v2 = vld [vmem:[#allocation11 + $0xa4] ss:$8 sps:$4 sm:$0xff]  }
 0x170   :  { %748 = vmatpush1.bf16.msra.mxu1 %v1878_v18 }
 0x171   :  { %749 = vmatprep.subr.bf16.mxu1 %v1883_v19 }
 0x174   :  { %750 = vmatpush1.bf16.msra.mxu1 %v1881_v20 }
 0x175   :  { %1740 = vmatprep.subr.bf16.mxu1 %v2159_v22 }
 0x217   :  { %v1694_v23 = vpop.f32.mrf.mxu1 }
 0x219   :  { %v1695_v25 = vpop.f32.mrf.mxu1 }
 0x21a   :  { %v1696_v26 = vadd.f32 %v1695_v25, %v1694_v23  ;;  %v1918_v23 = vld [vmem:[#allocation10 + $0x74] ss:$8 sps:$4 sm:$0xff]   ;;  %v1919_v25 = vld [vmem:[#allocation10 + $0x60] ss:$8 sps:$4 sm:$0xff]  }
 0x21b   :  { %v1697_v27 = vpop.f32.mrf.mxu1 }
 0x21c   :  { %v551_v28 = vadd.f32 %v1696_v26, %v1562_v24  ;;  %v1916_v24 = vld [vmem:[#allocation10 + $0x70] ss:$8 sps:$4 sm:$0xff]   ;;  %v1921_v26 = vld [vmem:[#allocation10 + $0x64] ss:$8 sps:$4 sm:$0xff]   ;;  %v1924_v27 = vld [vmem:[#allocation10 + $0x54] ss:$8 sps:$4 sm:$0xff]  }
 0x21d   :  { %v1698_v29 = vpop.f32.mrf.mxu1 }
 0x21e   :  { %v556_v30 = vmax.f32 %v551_v28, 0.0  ;;  %v1925_v28 = vld [vmem:[#allocation10 + $0x40] ss:$8 sps:$4 sm:$0xff]   ;;  %v1930_v29 = vld [vmem:[#allocation10 + $0x34] ss:$8 sps:$4 sm:$0xff]  }
 0x220   :  { %v590_v32 = vpack.c.bf16 %v556_v30, %v556_v30  ;;  %v1928_v30 = vld [vmem:[#allocation10 + $0x30] ss:$8 sps:$4 sm:$0xff]  }
 0x222   :  { %768 = vmatmul.mubr.bf16.vlgmr.msra.gmra.mxu1 %v590_v32 }
 0x223   :  { %1741 = vmatpush3.bf16.msra.mxu1 %v1884_v31  ;;  %1756 = vmatprep.mubr.msk.bf16.mxu1 %vm2160_vm0, %v2159_v22  ;;  %v1933_v31 = vld [vmem:[#allocation10 + $0x24] ss:$8 sps:$4 sm:$0xff]  }
 0x224   :  { %1742 = vmatprep.subr.bf16.mxu1 %v2159_v22 }
 0x227   :  { %1743 = vmatpush3.bf16.msra.mxu1 %v1885_v33  ;;  %v1936_v33 = vld [vmem:[#allocation10 + $0x14] ss:$8 sps:$4 sm:$0xff]  }
 0x228   :  { %1744 = vmatprep.subr.bf16.mxu1 %v2159_v22 }
 0x22b   :  { %1745 = vmatpush3.bf16.msra.mxu1 %v1886_v34  ;;  %v1934_v34 = vld [vmem:[#allocation10 + $0x10] ss:$8 sps:$4 sm:$0xff]  }
 0x22c   :  { %1746 = vmatprep.subr.bf16.mxu1 %v2159_v22 }
 0x22f   :  { %1747 = vmatpush3.bf16.msra.mxu1 %v1887_v35  ;;  %v1939_v35 = vld [vmem:[#allocation10 + $0x4] ss:$8 sps:$4 sm:$0xff]  }
 0x230   :  { %1748 = vmatprep.subr.bf16.mxu1 %v2159_v22 }
 0x233   :  { %1749 = vmatpush3.bf16.msra.mxu1 %v1888_v36  ;;  %v1937_v36 = vld [vmem:[#allocation10] ss:$8 sps:$4 sm:$0xff]  }
 0x234   :  { %1750 = vmatprep.subr.bf16.mxu1 %v2159_v22 }
 0x237   :  { %1751 = vmatpush3.bf16.msra.mxu1 %v1889_v37  ;;  %v1940_v37 = vld [vmem:[#allocation11 + $0x70] ss:$8 sps:$4 sm:$0xff]  }
 0x238   :  { %1752 = vmatprep.subr.bf16.mxu1 %v2159_v22 }
 0x23b   :  { %1753 = vmatpush3.bf16.msra.mxu1 %v1890_v38  ;;  %v1942_v38 = vld [vmem:[#allocation11 + $0x74] ss:$8 sps:$4 sm:$0xff]  }
 0x23c   :  { %1754 = vmatprep.subr.bf16.mxu1 %v2159_v22  ;;  %1457 = vmatprep.subr.bf16.mxu0 %v1942_v38 }
 0x23f   :  { %1755 = vmatpush3.bf16.msra.mxu1 %v1891_v39  ;;  %v1945_v39 = vld [vmem:[#allocation11 + $0x64] ss:$8 sps:$4 sm:$0xff]  }
 0x240   :  { %1709 = vmatprep.subr.bf16.mxu1 %v1892_v40  ;;  %v1943_v40 = vld [vmem:[#allocation11 + $0x60] ss:$8 sps:$4 sm:$0xff]  }
 0x242   :  { %1757 = vmatmul.mubr.bf16.vlgmr.msra.gmra.mxu1 %v590_v32  ;;  %v1931_v32 = vld [vmem:[#allocation10 + $0x20] ss:$8 sps:$4 sm:$0xff]  }
 0x243   :  { %1710 = vmatpush3.bf16.msra.mxu1 %v1893_v41  ;;  %v1948_v41 = vld [vmem:[#allocation11 + $0x54] ss:$8 sps:$4 sm:$0xff]  }
 0x244   :  { %1711 = vmatprep.subr.bf16.mxu1 %v1894_v42  ;;  %v1946_v42 = vld [vmem:[#allocation11 + $0x50] ss:$8 sps:$4 sm:$0xff]  }
 0x247   :  { %1712 = vmatpush3.bf16.msra.mxu1 %v1895_v43  ;;  %v1951_v43 = vld [vmem:[#allocation11 + $0x44] ss:$8 sps:$4 sm:$0xff]  }
 0x248   :  { %1713 = vmatprep.subr.bf16.mxu1 %v1896_v44  ;;  %v1949_v44 = vld [vmem:[#allocation11 + $0x40] ss:$8 sps:$4 sm:$0xff]  }
 0x24b   :  { %1714 = vmatpush3.bf16.msra.mxu1 %v1897_v45  ;;  %v1954_v45 = vld [vmem:[#allocation11 + $0x34] ss:$8 sps:$4 sm:$0xff]  }
 0x24c   :  { %1715 = vmatprep.subr.bf16.mxu1 %v1898_v46  ;;  %v1952_v46 = vld [vmem:[#allocation11 + $0x30] ss:$8 sps:$4 sm:$0xff]  }
 0x24f   :  { %1716 = vmatpush3.bf16.msra.mxu1 %v1899_v47  ;;  %v1957_v47 = vld [vmem:[#allocation11 + $0x24] ss:$8 sps:$4 sm:$0xff]  }
 0x250   :  { %1717 = vmatprep.subr.bf16.mxu1 %v1900_v48  ;;  %v1955_v48 = vld [vmem:[#allocation11 + $0x20] ss:$8 sps:$4 sm:$0xff]  }
 0x253   :  { %1718 = vmatpush3.bf16.msra.mxu1 %v1901_v49  ;;  %v1960_v49 = vld [vmem:[#allocation11 + $0x14] ss:$8 sps:$4 sm:$0xff]  }
 0x254   :  { %1719 = vmatprep.subr.bf16.mxu1 %v1902_v50  ;;  %v1958_v50 = vld [vmem:[#allocation11 + $0x10] ss:$8 sps:$4 sm:$0xff]  }
 0x257   :  { %1720 = vmatpush3.bf16.msra.mxu1 %v1903_v51  ;;  %v1963_v51 = vld [vmem:[#allocation11 + $0x4] ss:$8 sps:$4 sm:$0xff]  }
 0x258   :  { %1721 = vmatprep.subr.bf16.mxu1 %v1904_v52  ;;  %v1961_v52 = vld [vmem:[#allocation11] ss:$8 sps:$4 sm:$0xff]  }
 0x25b   :  { %1722 = vmatpush3.bf16.msra.mxu1 %v1905_v53  ;;  %v1966_v53 = vld [vmem:[#allocation11 + $0xf4] ss:$8 sps:$4 sm:$0xff]  }
 0x25c   :  { %1723 = vmatprep.subr.bf16.mxu1 %v1906_v56  ;;  %v1964_v56 = vld [vmem:[#allocation11 + $0xf0] ss:$8 sps:$4 sm:$0xff]  }
 0x25f   :  { %1724 = vmatpush3.bf16.msra.mxu1 %v1907_v58  ;;  %v1969_v58 = vld [vmem:[#allocation11 + $0xe4] ss:$8 sps:$4 sm:$0xff]  }
 0x260   :  { %1208 = vmatprep.subr.bf16.mxu1 %v1918_v23  ;;  %v1115_v23 = vld [vmem:[%s2333_s10] sm:$0x3]  ;;  %s2161_s10 = smov [#allocation13]  }
 0x2e2   :  { %v769_v6 = vpop.f32.mrf.mxu1 }
 0x2e3   :  { %v770_v7 = vadd.f32 %v769_v6, %v595_v4 }
 0x2e4   :  { %v771_v8 = vpop.f32.mrf.mxu1 }
 0x2e5   :  { %v772_v9 = vadd.f32 %v771_v8, %v599_v5  ;;  %v865_v12 = vpack.c.bf16 %v770_v7, %v770_v7 }
 0x2e6   :  { %v773_v10 = vpop.f32.mrf.mxu1 }
 0x2e7   :  { %v866_v11 = vpack.c.bf16 %v772_v9, %v772_v9  ;;  %v1603_v9 = vld [vmem:[%s2331_s8] ss:$0 sm:$0xff] }
 0x2e8   :  { %v774_v13 = vpop.f32.mrf.mxu1 }
 0x2e9   :  { %1050 = vmatprep.mubr.bf16.mxu1 %v866_v11 }
 0x2ea   :  { %1051 = vmatmul.mubr.bf16.vlgmr.msra.gmra.mxu1 %v865_v12 }
 0x2eb   :  { %1240 = vmatprep.mubr.bf16.mxu1 %v2158_v21  ;;  %1209 = vmatpush1.bf16.msra.mxu1 %v1916_v24  ;;  %v1922_v21 = vld [vmem:[#allocation10 + $0x50] ss:$8 sps:$4 sm:$0xff]   ;;  %v1121_v24 = vrot.slane %v1115_v23, %v2268_v55 }
 0x2ec   :  { %1210 = vmatprep.subr.bf16.mxu1 %v1921_v26 }
 0x2ef   :  { %1211 = vmatpush1.bf16.msra.mxu1 %v1919_v25  ;;  %v1125_v25 = vrot.slane %v1115_v23, %v2274_v57 }
 0x2f0   :  { %1212 = vmatprep.subr.bf16.mxu1 %v1924_v27 }
 0x2f3   :  { %1213 = vmatpush1.bf16.msra.mxu1 %v1922_v21 }
 0x2f4   :  { %1214 = vmatprep.subr.bf16.mxu1 %v1927_v54 }
 0x2f7   :  { %1215 = vmatpush1.bf16.msra.mxu1 %v1925_v28 }
 0x2f8   :  { %1216 = vmatprep.subr.bf16.mxu1 %v1930_v29 }
 0x2fb   :  { %1217 = vmatpush1.bf16.msra.mxu1 %v1928_v30 }
 0x2fc   :  { %1218 = vmatprep.subr.bf16.mxu1 %v1933_v31 }
 0x2ff   :  { %1219 = vmatpush1.bf16.msra.mxu1 %v1931_v32 }
 0x300   :  { %1220 = vmatprep.subr.bf16.mxu1 %v1936_v33 }
 0x302   :  { %v810_v16 = vpop.f32.mrf.mxu1 }
 0x303   :  { %v811_v17 = vadd.f32 %v810_v16, %v603_v15  ;;  %1221 = vmatpush1.bf16.msra.mxu1 %v1934_v34  ;;  %v1283_v34 = vld [vmem:[%s2335_s12] sm:$0x3]  ;;  %s1518_s12 = sshll.u32 %s2161_s10, 4  ;;  %s1519_s12 = int_to_ptr.vmem [resolvable:$true] %s1518_s12 }
 0x304   :  { %v1758_v18 = vpop.f32.mrf.mxu1  ;;  %1222 = vmatprep.subr.bf16.mxu1 %v1939_v35  ;;  %v1290_v35 = vrot.slane %v1283_v34, %v2268_v55  ;;  %s2116_s30 = scalar_lea.vmem %s1519_s12, 256  ;;  %p2121_p3 = scmp.lt.s32.totalorder %s1519_s12, %s1519_s12 }
 0x305   :  { %v867_v19 = vpack.c.bf16 %v811_v17, %v811_v17  ;;  %v1984_v18 = vld [vmem:[#allocation11 + $0x94] ss:$8 sps:$4 sm:$0xff]   ;;  %p2117_p2 = scmp.ne.s32.totalorder %s1519_s12, %s2116_s30  ;;  %p2122_p4 = scmp.lt.s32.totalorder %s2116_s30, %s2116_s30 }
 0x306   :  { %v813_v20 = vpop.f32.mrf.mxu1 }
 0x307   :  { %1777 = vmatmul.mubr.bf16.vlgmr.msra.gmra.mxu0 %v867_v19  ;;  %1223 = vmatpush1.bf16.msra.mxu1 %v1937_v36  ;;  %v1982_v19 = vld [vmem:[#allocation11 + $0x90] ss:$8 sps:$4 sm:$0xff]   ;;  %v1987_v20 = vld [vmem:[#allocation11 + $0x84] ss:$8 sps:$4 sm:$0xff]   ;;  %v1294_v36 = vrot.slane %v1283_v34, %v2274_v57  ;;  %p2123_p5 = por %p2122_p4, %p2121_p3 }
 0x308   :  { %v1759_v22 = vpop.f32.mrf.mxu1  ;;  %1458 = vmatpush1.bf16.msra.mxu0 %v1940_v37 }
 0x309   :  { %1459 = vmatprep.subr.bf16.mxu0 %v1945_v39  ;;  %v1985_v22 = vld [vmem:[#allocation11 + $0x80] ss:$8 sps:$4 sm:$0xff]   ;;  %p2124_p6 = pnand %p2123_p5, %p2117_p2 }
 0x30c   :  { %1460 = vmatpush1.bf16.msra.mxu0 %v1943_v40 }
 0x30d   :  { %1461 = vmatprep.subr.bf16.mxu0 %v1948_v41 }
 0x310   :  { %1462 = vmatpush1.bf16.msra.mxu0 %v1946_v42 }
 0x311   :  { %1463 = vmatprep.subr.bf16.mxu0 %v1951_v43 }
 0x314   :  { %1464 = vmatpush1.bf16.msra.mxu0 %v1949_v44 }
 0x315   :  { %1465 = vmatprep.subr.bf16.mxu0 %v1954_v45 }
 0x318   :  { %1466 = vmatpush1.bf16.msra.mxu0 %v1952_v46 }
 0x319   :  { %1467 = vmatprep.subr.bf16.mxu0 %v1957_v47 }
 0x31c   :  { %1468 = vmatpush1.bf16.msra.mxu0 %v1955_v48 }
 0x31d   :  { %1469 = vmatprep.subr.bf16.mxu0 %v1960_v49 }
 0x320   :  { %1470 = vmatpush1.bf16.msra.mxu0 %v1958_v50 }
 0x321   :  { %1471 = vmatprep.subr.bf16.mxu0 %v1963_v51 }
 0x324   :  { %1472 = vmatpush1.bf16.msra.mxu0 %v1961_v52 }
 0x325   :  { %1473 = vmatprep.subr.bf16.mxu0 %v1966_v53 }
 0x328   :  { %1474 = vmatpush2.bf16.msra.mxu0 %v1964_v56 }
 0x329   :  { %1475 = vmatprep.subr.bf16.mxu0 %v1969_v58 }
 0x32c   :  { %1476 = vmatpush2.bf16.msra.mxu0 %v1967_v59 }
 0x32d   :  { %1477 = vmatprep.subr.bf16.mxu0 %v1972_v60 }
 0x330   :  { %1478 = vmatpush2.bf16.msra.mxu0 %v1970_v61 }
 0x331   :  { %1479 = vmatprep.subr.bf16.mxu0 %v1975_v62 }
 0x334   :  { %1480 = vmatpush2.bf16.msra.mxu0 %v1973_v63 }
 0x335   :  { %1481 = vmatprep.subr.bf16.mxu0 %v1978_v0 }
 0x338   :  { %1482 = vmatpush2.bf16.msra.mxu0 %v1976_v1 }
 0x339   :  { %1483 = vmatprep.subr.bf16.mxu0 %v1981_v2 }
 0x33c   :  { %1484 = vmatpush2.bf16.msra.mxu0 %v1979_v3 }
 0x33d   :  { %1485 = vmatprep.subr.bf16.mxu0 %v1984_v18 }
 0x340   :  { %1486 = vmatpush2.bf16.msra.mxu0 %v1982_v19 }
 0x341   :  { %1487 = vmatprep.subr.bf16.mxu0 %v1987_v20 }
 0x344   :  { %1488 = vmatpush2.bf16.msra.mxu0 %v1985_v22 }
 0x3aa   :  { %v1725_v4 = vpop.f32.mrf.mxu1 }
 0x3ac   :  { %v1726_v5 = vpop.f32.mrf.mxu1 }
 0x3ad   :  { %v1727_v8 = vadd.f32 %v1726_v5, %v1725_v4 }
 0x3ae   :  { %v1728_v6 = vpop.f32.mrf.mxu1 }
 0x3af   :  { %v1053_v10 = vadd.f32 %v1727_v8, %v1603_v9 }
 0x3b0   :  { %v1729_v7 = vpop.f32.mrf.mxu1 }
 0x3c7   :  { %v1092_v11 = vpop.f32.mrf.mxu0 }
 0x3c8   :  { %v1093_v12 = vadd.f32 %v1092_v11, %v1053_v10 }
 0x3c9   :  { %v1778_v13 = vpop.f32.mrf.mxu0 }
 0x3ca   :  { %v1098_v14 = vmax.f32 %v1093_v12, 0.0 }
 0x3cb   :  { %v1095_v15 = vpop.f32.mrf.mxu0 }
 0x3cc   :  { %v1116_v16 = vpack.c.bf16 %v1098_v14, %v1098_v14 }
 0x3cd   :  { %v1779_v17 = vpop.f32.mrf.mxu0 }
 0x3ce   :  { %1241 = vmatmul.mubr.bf16.vlgmr.msra.gmra.mxu1 %v1116_v16 }
 0x48e   :  { %v1242_v26 = vpop.f32.mrf.mxu1 }
 0x48f   :  { %v1243_v27 = vadd.f32 %v1242_v26, %v1121_v24 }
 0x490   :  { %v1244_v21 = vpop.f32.mrf.mxu1 }
 0x491   :  { %v1245_v54 = vadd.f32 %v1244_v21, %v1125_v25  ;;  %v1249_v28 = vmax.f32 %v1243_v27, 0.0 }
 0x492   :  { %v1246_v29 = vpop.f32.mrf.mxu1 }
 0x493   :  { %v1250_v30 = vmax.f32 %v1245_v54, 0.0  ;;  %v1284_v33 = vpack.c.bf16 %v1249_v28, %v1249_v28 }
 0x494   :  { %v1247_v31 = vpop.f32.mrf.mxu1 }
 0x495   :  { %v1285_v32 = vpack.c.bf16 %v1250_v30, %v1250_v30 }
 0x497   :  { %1489 = vmatprep.mubr.bf16.mxu0 %v1285_v32 }
 0x498   :  { %1490 = vmatmul.mubr.bf16.vlgmr.msra.gmra.mxu0 %v1284_v33 }
 0x558   :  { %v1491_v37 = vpop.f32.mrf.mxu0 }
 0x559   :  { %v1492_v38 = vadd.f32 %v1491_v37, %v1290_v35 }
 0x55a   :  { %v1493_v39 = vpop.f32.mrf.mxu0 }
 0x55b   :  { %v1676_v40 = vmul.f32 -1.442695, %v1492_v38  ;;  %v1494_v41 = vadd.f32 %v1493_v39, %v1294_v36 }
 0x55c   :  { %v1495_v42 = vpop.f32.mrf.mxu0 }
 0x55d   :  { %1988 = vpow2.f32 %v1676_v40  ;;  %v1677_v43 = vmul.f32 -1.442695, %v1494_v41 }
 0x55e   :  { %v1496_v44 = vpop.f32.mrf.mxu0 }
 0x55f   :  { %1990 = vpow2.f32 %v1677_v43 }
 0x56a   :  { %v1989_v45 = vpop.eup %1988 }
 0x56b   :  { %v1504_v46 = vadd.f32 1.0, %v1989_v45 }
 0x56c   :  { %v1991_v47 = vpop.eup %1990 }
 0x56d   :  { %1992 = vrcp.f32 %v1504_v46  ;;  %v1505_v48 = vadd.f32 1.0, %v1991_v47 }
 0x56f   :  { %1994 = vrcp.f32 %v1505_v48 }
 0x57a   :  { %v1993_v55 = vpop.eup %1992 }
 0x57b   :  { %1510 = vst [vmem:[#allocation13] sm:$0xff] %v1993_v55 }
 0x57c   :  { %v1995_v57 = vpop.eup %1994 }
 0x57d   :  { %1511 = vst [vmem:[#allocation13 + $0x8] sm:$0xff] %v1995_v57 }
 0x57e   :  { %2127 = shalt.err (!%p2124_p6)
}
 0x57f   :  { %1521 = dma.vmem_to_hbm [thread:$0]  %s1519_s12, 256, %s2336_s13, [#allocation4]  }
 0x580   :  { %2144 = dma.done.wait [#allocation4], 256  }
 0x581   :  { %2145 = vsyncadd [#allocation4], 4294967040 }
 0x582   :  { %1525 = vsyncpa [#allocation3], 1 }
 0x583   :  { %1526 = vsyncpa [#allocation6], 1 }
 0x584   :  { %1527 = vsyncpa [#allocation9], 1 }
 0x585   :  { %1528 = vsyncpa [#allocation12], 1 }
 0x586   :  { %1529 = vsyncpa [#allocation4], 1 }

</bundles_post_ra>
